<compile_context>
chip_gen: v7x
topology: tpu7x:2x2x1
jax: 0.10.0
libtpu: 0.0.40
codegen_flags: <defaults>
</compile_context>

<pallas_src>
import functools

import jax
import jax.numpy as jnp
from jax.experimental import pallas as pl
from jax.experimental.pallas import tpu as pltpu

TAU = 0.5
T1 = 3
T2 = 3


def _combnet_kernel(x_ref, w_ref, out_ref, *, k):
    # Single fused matmul: x (N, Dp) bf16  @  W (Dp, 128) bf16  -> f32 (N, 128)
    # W packs [w1 | w2 | 0-pad] with the biases folded into the constant-1
    # column of x, so no separate bias add is needed.
    y = jnp.dot(x_ref[...], w_ref[...], preferred_element_type=jnp.float32)

    x1 = y[:, :k]          # net_orig logits (N, K), f32
    x2 = y[:, k:2 * k]     # net_fake logits (N, K), f32

    # ---- comp_max_tau(x1, tau, t1, t2) ----
    # PyTorch: res = cat([x1, tau*ones(N,1)], 1); the tau column is carried as
    # a separate (N,1) vector `t` (identical math, avoids an in-kernel concat).
    n = x1.shape[0]
    r = x1
    t = jnp.full((n, 1), TAU, dtype=jnp.float32)
    for i in range(T1):
        r = r * r
        t = t * t
        s = jnp.sum(r, axis=1, keepdims=True) + t          # res.sum(1)
        m = (2.0 + TAU * TAU) if i == 0 else 2.0
        # inv_apprx(s, T2, m): Newton-like reciprocal approximation
        a = 2.0 - (2.0 / m) * s
        b = 1.0 - (2.0 / m) * s
        for _ in range(T2):
            b = b * b
            a = a * (1.0 + b)
        inv = (2.0 / m) * a
        r = r * inv
        t = t * inv
    cond = t                                               # res[:, -1], (N,1)

    # blend: x1*(1-cond) + x2*cond  ==  x1 + cond*(x2 - x1)
    out_ref[...] = x1 + cond * (x2 - x1)


def combnet_he_forward(x_nchw, w1, b1, w2, b2):
    n = x_nchw.shape[0]
    d = x_nchw.shape[1] * x_nchw.shape[2] * x_nchw.shape[3]
    k = w1.shape[1]
    assert 2 * k <= 128, "fused head width must fit one 128-lane vreg"

    dp = ((d + 1 + 127) // 128) * 128   # contraction dim: D + bias column, lane-aligned
    kp = 128                            # lane-dense fused output width

    # Fuse both heads + fold biases into one zero-padded (dp, kp) weight slab.
    wp = jnp.zeros((dp, kp), jnp.float32)
    wp = wp.at[:d, :k].set(w1.astype(jnp.float32))
    wp = wp.at[:d, k:2 * k].set(w2.astype(jnp.float32))
    wp = wp.at[d, :k].set(b1.astype(jnp.float32))
    wp = wp.at[d, k:2 * k].set(b2.astype(jnp.float32))

    xp = jnp.zeros((n, dp), jnp.float32)
    xp = xp.at[:, :d].set(x_nchw.reshape(n, d).astype(jnp.float32))
    xp = xp.at[:, d].set(1.0)           # bias column

    # bf16 operands, f32 MXU accumulation (native fast path on v6e/v7x).
    xp = xp.astype(jnp.bfloat16)
    wp = wp.astype(jnp.bfloat16)

    kernel = functools.partial(_combnet_kernel, k=k)
    return pl.pallas_call(
        kernel,
        out_shape=jax.ShapeDtypeStruct((n, k), jnp.float32),
        grid=(1,),
        in_specs=[
            pl.BlockSpec((n, dp), lambda i: (0, 0)),
            pl.BlockSpec((dp, kp), lambda i: (0, 0)),
        ],
        out_specs=pl.BlockSpec((n, k), lambda i: (0, 0)),
        compiler_params=pltpu.CompilerParams(
            dimension_semantics=("arbitrary",)
        ),
    )(xp, wp)


# ----------------------- pure-JAX reference (for checking) -----------------------
def _inv_apprx_ref(x, t, m):
    a = 2.0 - 2.0 / m * x
    b = 1.0 - 2.0 / m * x
    for _ in range(t):
        b = b * b
        a = a * (1.0 + b)
    return 2.0 / m * a


def _comp_max_tau_ref(out, tau, t1, t2):
    n = out.shape[0]
    res = jnp.concatenate([out, tau * jnp.ones((n, 1), out.dtype)], axis=1)
    for i in range(t1):
        res = res * res
        s = res.sum(1)
        m = 2.0 + tau * tau if i == 0 else 2.0
        inv = _inv_apprx_ref(s, t2, m)
        res = res * inv.reshape(-1, 1)
    return res[:, -1]


def _forward_ref(x_nchw, w1, b1, w2, b2):
    n = x_nchw.shape[0]
    xf = x_nchw.reshape(n, -1)
    # Mirror the kernel's precision: bf16 inputs/weights, f32 accumulation.
    xb = xf.astype(jnp.bfloat16)
    x1 = (jnp.dot(xb, w1.astype(jnp.bfloat16), preferred_element_type=jnp.float32)
          + b1.astype(jnp.bfloat16).astype(jnp.float32))
    x2 = (jnp.dot(xb, w2.astype(jnp.bfloat16), preferred_element_type=jnp.float32)
          + b2.astype(jnp.bfloat16).astype(jnp.float32))
    cond = _comp_max_tau_ref(x1, TAU, T1, T2)
    return x1 * (1.0 - cond.reshape(-1, 1)) + x2 * cond.reshape(-1, 1)


if __name__ == "__main__":
    key = jax.random.PRNGKey(0)
    kx, k1, k2, k3, k4 = jax.random.split(key, 5)

    N, C, H, W = 2, 4, 16, 16
    D = C * H * W
    K = 10  # number of output classes of each sub-net

    x = jax.random.normal(kx, (N, C, H, W), dtype=jnp.float32)
    # Deterministic "Linear" parameters for net_orig / net_fake.  The scale is
    # chosen so the logits stay inside comp_max_tau's convergence range
    # (sum(x1^2) + tau^2 < 2 + tau^2), which the HE approximation requires.
    scale = 0.004
    w1 = jax.random.normal(k1, (D, K), dtype=jnp.float32) * scale
    b1 = jax.random.normal(k2, (K,), dtype=jnp.float32) * scale
    w2 = jax.random.normal(k3, (D, K), dtype=jnp.float32) * scale
    b2 = jax.random.normal(k4, (K,), dtype=jnp.float32) * scale

    out = combnet_he_forward(x, w1, b1, w2, b2)
    out = jax.block_until_ready(out)

    ref = _forward_ref(x, w1, b1, w2, b2)
    assert out.shape == (N, K)
    assert bool(jnp.isfinite(out).all()), "non-finite output"
    assert jnp.allclose(out, ref, atol=1e-3, rtol=1e-3), "mismatch vs reference"

    print("KERNEL_OK")
</pallas_src>

<mosaic_0001>
module attributes {stable_mosaic.version = 11 : i64} {
  func.func @_combnet_kernel(%arg0: i32, %arg1: memref<2x1152xbf16, #tpu.memory_space<vmem>>, %arg2: memref<1152x128xbf16, #tpu.memory_space<vmem>>, %arg3: memref<2x10xf32, #tpu.memory_space<vmem>>) attributes {dimension_semantics = [#tpu.dimension_semantics<arbitrary>], iteration_bounds = array<i64: 1>, scalar_prefetch = 0 : i64, scratch_operands = 0 : i64, tpu.core_type = #tpu.core_type<tc>, window_params = [{pipeline_mode = #tpu.pipeline_mode<synchronous>, transform_indices = @transform_0, window_bounds = array<i64: 2, 1152>}, {pipeline_mode = #tpu.pipeline_mode<synchronous>, transform_indices = @transform_1, window_bounds = array<i64: 1152, 128>}, {pipeline_mode = #tpu.pipeline_mode<synchronous>, transform_indices = @transform_2, window_bounds = array<i64: 2, 10>}]} {
    %c0 = arith.constant 0 : index
    %c0_0 = arith.constant 0 : index
    %0 = vector.load %arg1[%c0, %c0_0] : memref<2x1152xbf16, #tpu.memory_space<vmem>>, vector<2x1152xbf16>
    %c0_1 = arith.constant 0 : index
    %c0_2 = arith.constant 0 : index
    %1 = vector.load %arg2[%c0_1, %c0_2] : memref<1152x128xbf16, #tpu.memory_space<vmem>>, vector<1152x128xbf16>
    %cst = arith.constant dense<0.000000e+00> : vector<2x128xf32>
    %2 = tpu.matmul %0, %1, %cst {dimension_numbers = #tpu.dot_dimension_numbers<[1], [0], [0], [1], [0, 0, 1, 1], [], []>} : vector<2x1152xbf16>, vector<1152x128xbf16>, vector<2x128xf32> -> vector<2x128xf32>
    %3 = vector.extract_strided_slice %2 {offsets = [0, 0], sizes = [2, 10], strides = [1, 1]} : vector<2x128xf32> to vector<2x10xf32>
    %4 = vector.extract_strided_slice %2 {offsets = [0, 10], sizes = [2, 10], strides = [1, 1]} : vector<2x128xf32> to vector<2x10xf32>
    %cst_3 = arith.constant 5.000000e-01 : f32
    %5 = vector.broadcast %cst_3 : f32 to vector<2x1xf32>
    %6 = arith.mulf %3, %3 : vector<2x10xf32>
    %7 = arith.mulf %5, %5 : vector<2x1xf32>
    %cst_4 = arith.constant dense<0.000000e+00> : vector<2xf32>
    %8 = vector.multi_reduction <add>, %6, %cst_4 [1] : vector<2x10xf32> to vector<2xf32>
    %9 = vector.shape_cast %8 : vector<2xf32> to vector<2x1xf32>
    %10 = arith.addf %9, %7 : vector<2x1xf32>
    %cst_5 = arith.constant 0.888888895 : f32
    %11 = vector.broadcast %cst_5 : f32 to vector<2x1xf32>
    %12 = arith.mulf %11, %10 : vector<2x1xf32>
    %cst_6 = arith.constant 2.000000e+00 : f32
    %13 = vector.broadcast %cst_6 : f32 to vector<2x1xf32>
    %14 = arith.subf %13, %12 : vector<2x1xf32>
    %cst_7 = arith.constant 0.888888895 : f32
    %15 = vector.broadcast %cst_7 : f32 to vector<2x1xf32>
    %16 = arith.mulf %15, %10 : vector<2x1xf32>
    %cst_8 = arith.constant 1.000000e+00 : f32
    %17 = vector.broadcast %cst_8 : f32 to vector<2x1xf32>
    %18 = arith.subf %17, %16 : vector<2x1xf32>
    %19 = arith.mulf %18, %18 : vector<2x1xf32>
    %cst_9 = arith.constant 1.000000e+00 : f32
    %20 = vector.broadcast %cst_9 : f32 to vector<2x1xf32>
    %21 = arith.addf %20, %19 : vector<2x1xf32>
    %22 = arith.mulf %14, %21 : vector<2x1xf32>
    %23 = arith.mulf %19, %19 : vector<2x1xf32>
    %cst_10 = arith.constant 1.000000e+00 : f32
    %24 = vector.broadcast %cst_10 : f32 to vector<2x1xf32>
    %25 = arith.addf %24, %23 : vector<2x1xf32>
    %26 = arith.mulf %22, %25 : vector<2x1xf32>
    %27 = arith.mulf %23, %23 : vector<2x1xf32>
    %cst_11 = arith.constant 1.000000e+00 : f32
    %28 = vector.broadcast %cst_11 : f32 to vector<2x1xf32>
    %29 = arith.addf %28, %27 : vector<2x1xf32>
    %30 = arith.mulf %26, %29 : vector<2x1xf32>
    %cst_12 = arith.constant 0.888888895 : f32
    %31 = vector.broadcast %cst_12 : f32 to vector<2x1xf32>
    %32 = arith.mulf %31, %30 : vector<2x1xf32>
    %33 = vector.broadcast %32 : vector<2x1xf32> to vector<2x10xf32>
    %34 = arith.mulf %6, %33 : vector<2x10xf32>
    %35 = arith.mulf %7, %32 : vector<2x1xf32>
    %36 = arith.mulf %34, %34 : vector<2x10xf32>
    %37 = arith.mulf %35, %35 : vector<2x1xf32>
    %cst_13 = arith.constant dense<0.000000e+00> : vector<2xf32>
    %38 = vector.multi_reduction <add>, %36, %cst_13 [1] : vector<2x10xf32> to vector<2xf32>
    %39 = vector.shape_cast %38 : vector<2xf32> to vector<2x1xf32>
    %40 = arith.addf %39, %37 : vector<2x1xf32>
    %cst_14 = arith.constant 1.000000e+00 : f32
    %41 = vector.broadcast %cst_14 : f32 to vector<2x1xf32>
    %42 = arith.mulf %41, %40 : vector<2x1xf32>
    %cst_15 = arith.constant 2.000000e+00 : f32
    %43 = vector.broadcast %cst_15 : f32 to vector<2x1xf32>
    %44 = arith.subf %43, %42 : vector<2x1xf32>
    %cst_16 = arith.constant 1.000000e+00 : f32
    %45 = vector.broadcast %cst_16 : f32 to vector<2x1xf32>
    %46 = arith.mulf %45, %40 : vector<2x1xf32>
    %cst_17 = arith.constant 1.000000e+00 : f32
    %47 = vector.broadcast %cst_17 : f32 to vector<2x1xf32>
    %48 = arith.subf %47, %46 : vector<2x1xf32>
    %49 = arith.mulf %48, %48 : vector<2x1xf32>
    %cst_18 = arith.constant 1.000000e+00 : f32
    %50 = vector.broadcast %cst_18 : f32 to vector<2x1xf32>
    %51 = arith.addf %50, %49 : vector<2x1xf32>
    %52 = arith.mulf %44, %51 : vector<2x1xf32>
    %53 = arith.mulf %49, %49 : vector<2x1xf32>
    %cst_19 = arith.constant 1.000000e+00 : f32
    %54 = vector.broadcast %cst_19 : f32 to vector<2x1xf32>
    %55 = arith.addf %54, %53 : vector<2x1xf32>
    %56 = arith.mulf %52, %55 : vector<2x1xf32>
    %57 = arith.mulf %53, %53 : vector<2x1xf32>
    %cst_20 = arith.constant 1.000000e+00 : f32
    %58 = vector.broadcast %cst_20 : f32 to vector<2x1xf32>
    %59 = arith.addf %58, %57 : vector<2x1xf32>
    %60 = arith.mulf %56, %59 : vector<2x1xf32>
    %cst_21 = arith.constant 1.000000e+00 : f32
    %61 = vector.broadcast %cst_21 : f32 to vector<2x1xf32>
    %62 = arith.mulf %61, %60 : vector<2x1xf32>
    %63 = vector.broadcast %62 : vector<2x1xf32> to vector<2x10xf32>
    %64 = arith.mulf %36, %63 : vector<2x10xf32>
    %65 = arith.mulf %37, %62 : vector<2x1xf32>
    %66 = arith.mulf %64, %64 : vector<2x10xf32>
    %67 = arith.mulf %65, %65 : vector<2x1xf32>
    %cst_22 = arith.constant dense<0.000000e+00> : vector<2xf32>
    %68 = vector.multi_reduction <add>, %66, %cst_22 [1] : vector<2x10xf32> to vector<2xf32>
    %69 = vector.shape_cast %68 : vector<2xf32> to vector<2x1xf32>
    %70 = arith.addf %69, %67 : vector<2x1xf32>
    %cst_23 = arith.constant 1.000000e+00 : f32
    %71 = vector.broadcast %cst_23 : f32 to vector<2x1xf32>
    %72 = arith.mulf %71, %70 : vector<2x1xf32>
    %cst_24 = arith.constant 2.000000e+00 : f32
    %73 = vector.broadcast %cst_24 : f32 to vector<2x1xf32>
    %74 = arith.subf %73, %72 : vector<2x1xf32>
    %cst_25 = arith.constant 1.000000e+00 : f32
    %75 = vector.broadcast %cst_25 : f32 to vector<2x1xf32>
    %76 = arith.mulf %75, %70 : vector<2x1xf32>
    %cst_26 = arith.constant 1.000000e+00 : f32
    %77 = vector.broadcast %cst_26 : f32 to vector<2x1xf32>
    %78 = arith.subf %77, %76 : vector<2x1xf32>
    %79 = arith.mulf %78, %78 : vector<2x1xf32>
    %cst_27 = arith.constant 1.000000e+00 : f32
    %80 = vector.broadcast %cst_27 : f32 to vector<2x1xf32>
    %81 = arith.addf %80, %79 : vector<2x1xf32>
    %82 = arith.mulf %74, %81 : vector<2x1xf32>
    %83 = arith.mulf %79, %79 : vector<2x1xf32>
    %cst_28 = arith.constant 1.000000e+00 : f32
    %84 = vector.broadcast %cst_28 : f32 to vector<2x1xf32>
    %85 = arith.addf %84, %83 : vector<2x1xf32>
    %86 = arith.mulf %82, %85 : vector<2x1xf32>
    %87 = arith.mulf %83, %83 : vector<2x1xf32>
    %cst_29 = arith.constant 1.000000e+00 : f32
    %88 = vector.broadcast %cst_29 : f32 to vector<2x1xf32>
    %89 = arith.addf %88, %87 : vector<2x1xf32>
    %90 = arith.mulf %86, %89 : vector<2x1xf32>
    %cst_30 = arith.constant 1.000000e+00 : f32
    %91 = vector.broadcast %cst_30 : f32 to vector<2x1xf32>
    %92 = arith.mulf %91, %90 : vector<2x1xf32>
    %93 = arith.mulf %67, %92 : vector<2x1xf32>
    %94 = arith.subf %4, %3 : vector<2x10xf32>
    %95 = vector.broadcast %93 : vector<2x1xf32> to vector<2x10xf32>
    %96 = arith.mulf %95, %94 : vector<2x10xf32>
    %97 = arith.addf %3, %96 : vector<2x10xf32>
    %c0_31 = arith.constant 0 : index
    %c0_32 = arith.constant 0 : index
    %98 = vector.load %arg3[%c0_31, %c0_32] : memref<2x10xf32, #tpu.memory_space<vmem>>, vector<2x10xf32>
    tpu.vector_store %arg3[%c0_31, %c0_32], %97 {strides = array<i32>} : memref<2x10xf32, #tpu.memory_space<vmem>>, vector<2x10xf32>,
    return
  }
  func.func @transform_0(%arg0: i32) -> (i32, i32) {
    %c0_i32 = arith.constant 0 : i32
    %c0_i32_0 = arith.constant 0 : i32
    %c0_i32_1 = arith.constant 0 : i32
    return %c0_i32, %c0_i32_0 : i32, i32
  }
  func.func @transform_1(%arg0: i32) -> (i32, i32) {
    %c0_i32 = arith.constant 0 : i32
    %c0_i32_0 = arith.constant 0 : i32
    %c0_i32_1 = arith.constant 0 : i32
    return %c0_i32, %c0_i32_0 : i32, i32
  }
  func.func @transform_2(%arg0: i32) -> (i32, i32) {
    %c0_i32 = arith.constant 0 : i32
    %c0_i32_0 = arith.constant 0 : i32
    %c0_i32_1 = arith.constant 0 : i32
    return %c0_i32, %c0_i32_0 : i32, i32
  }
}

</mosaic_0001>

<bundles_post_ra>
// kernel: tpu_custom_call.1
= control target key start
LH: loop header
LB: loop body
LE: loop exit
PB: predicated region body
PF: predicated region fallthrough
CT: control target
= control target key end

     0   :  { %7 = vsyncpa [#allocation3], 0  ;;  %s1415_s0 = inlined_call_operand.hbm [shape: bf16[2,1152], index: 0, kind: input, shape index: {}]   ;;  %s1416_s1 = inlined_call_operand.hbm [shape: bf16[1152,128], index: 1, kind: input, shape index: {}]   ;;  %s1417_s2 = inlined_call_operand.hbm [shape: f32[2,10], index: 2, kind: output, shape index: {}]  }
   0x1   :  { %8 = vsyncpa [#allocation6], 0 }
   0x2   :  { %9 = vsyncpa [#allocation4], 0  ;;  %s1322_s9 = smov [#allocation2]   ;;  %s1323_s11 = smov [#allocation5]  }
   0x3   :  { %s16_s10 = sshll.u32 %s1322_s9, 4  ;;  %s25_s12 = sshll.u32 %s1323_s11, 4  ;;  %s17_s10 = int_to_ptr.vmem [resolvable:$true] %s16_s10  ;;  %s1347_s12 = int_to_ptr.vmem [resolvable:$true] %s25_s12 }
   0x4   :  { %s1250_s15 = scalar_lea.hbm %s1415_s0, 144 }
   0x5   :  { %p1251_p0 = scmp.ne.s32.totalorder %s1415_s0, %s1250_s15  ;;  %p1254_p1 = scmp.lt.u32.totalorder %s1250_s15, %s1415_s0 }
   0x7   :  { %p1256_p2 = pnand %p1254_p1, %p1251_p0 }
   0x9   :  { %1259 = shalt.err (!%p1256_p2)
}
   0xa   :  { %s1260_s20 = scalar_lea.vmem %s17_s10, 144  ;;  %s1264_s21 = scalar_lea.vmem %s17_s10, 160 }
   0xb   :  { %p1261_p3 = scmp.ne.s32.totalorder %s17_s10, %s1260_s20  ;;  %p1265_p4 = scmp.lt.s32.totalorder %s17_s10, %s17_s10 }
   0xc   :  { %p1266_p5 = scmp.lt.s32.totalorder %s1264_s21, %s1260_s20 }
   0xe   :  { %p1267_p6 = por %p1266_p5, %p1265_p4 }
  0x10   :  { %p1268_p7 = pnand %p1267_p6, %p1261_p3 }
  0x12   :  { %1271 = shalt.err (!%p1268_p7)
}
  0x13   :  { %19 = dma.hbm_to_vmem [thread:$0]  %s1415_s0, 144, %s17_s10, [#allocation3]  }
  0x14   :  { %s1272_s26 = scalar_lea.hbm %s1416_s1, 9216 }
  0x15   :  { %p1273_p8 = scmp.ne.s32.totalorder %s1416_s1, %s1272_s26  ;;  %p1276_p9 = scmp.lt.u32.totalorder %s1272_s26, %s1416_s1 }
  0x17   :  { %p1278_p10 = pnand %p1276_p9, %p1273_p8 }
  0x19   :  { %1281 = shalt.err (!%p1278_p10)
}
  0x1a   :  { %s1282_s3 = scalar_lea.vmem %s1347_s12, 9216  ;;  %p1287_p12 = scmp.lt.s32.totalorder %s1347_s12, %s1347_s12 }
  0x1b   :  { %p1283_p11 = scmp.ne.s32.totalorder %s1347_s12, %s1282_s3  ;;  %p1288_p13 = scmp.lt.s32.totalorder %s1282_s3, %s1282_s3 }
  0x1d   :  { %p1289_p0 = por %p1288_p13, %p1287_p12 }
  0x1f   :  { %p1290_p1 = pnand %p1289_p0, %p1283_p11 }
  0x21   :  { %1293 = shalt.err (!%p1290_p1)
}
  0x22   :  { %s1324_s0 = smov 64   ;;  %s1325_s4 = smov 4  }
  0x23   :  { %31 = dma.hbm_to_vmem [thread:$0]  %s1416_s1, 9216, %s1347_s12, [#allocation6], %s1324_s0, %s1324_s0, %s1325_s4  }
  0x24   :  { %1316 = dma.done.wait [#allocation3], 144  }
  0x25   :  { %1317 = vsyncadd [#allocation3], 4294967152 }
  0x26   :  { %1318 = dma.done.wait [#allocation6], 9216  }
  0x27   :  { %1319 = vsyncadd [#allocation6], 4294958080  ;;  %v1177_v0 = vld [vmem:[#allocation5 + $0x40] sm:$0xff]   ;;  %v1181_v4 = vld [vmem:[#allocation5 + $0x48] sm:$0xff]   ;;  %v1326_v22 = vmov 1966171168   ;;  %v191_v24 = vlaneseq }
  0x28   :  { %v1178_v1 = vld [vmem:[#allocation5 + $0xc0] sm:$0xff]   ;;  %1050 = vmatprep.subr.bf16.mxu0 %v1177_v0  ;;  %v1182_v5 = vld [vmem:[#allocation5 + $0xc8] sm:$0xff]   ;;  %v1185_v8 = vld [vmem:[#allocation5 + $0x50] sm:$0xff]   ;;  %v189_v23 = vunpack.c.l.s4 %v1326_v22  ;;  %vm1328_vm0 = vmmov 0   ;;  %vm892_vm1 = vcmask 74752   ;;  %s1329_s1 = smov 10  }
  0x29   :  { %v1179_v2 = vld [vmem:[#allocation5] sm:$0xff]   ;;  %1072 = vmatprep.subr.bf16.mxu1 %v1178_v1  ;;  %v1183_v6 = vld [vmem:[#allocation5 + $0x8] sm:$0xff]   ;;  %v1186_v9 = vld [vmem:[#allocation5 + $0xd0] sm:$0xff]   ;;  %v192_v30 = vshrl.u32 %v191_v24, 7  ;;  %s1330_s7 = smov 118   ;;  %s1331_s8 = smov [#allocation7]  }
  0x2a   :  { %v1180_v3 = vld [vmem:[#allocation5 + $0x80] sm:$0xff]   ;;  %1051 = vmatpush3.bf16.msra.mxu0 %v1179_v2  ;;  %v1184_v7 = vld [vmem:[#allocation5 + $0x88] sm:$0xff]   ;;  %v1187_v10 = vld [vmem:[#allocation5 + $0x10] sm:$0xff]   ;;  %v190_v29 = vunpack.c.0.s8 %v189_v23  ;;  %s967_s9 = sshll.u32 %s1331_s8, 4  ;;  %s968_s9 = int_to_ptr.vmem [resolvable:$true] %s967_s9 }
  0x2b   :  { %1073 = vmatpush3.bf16.msra.mxu1 %v1180_v3  ;;  %1052 = vmatprep.subr.bf16.mxu0 %v1181_v4  ;;  %v1188_v11 = vld [vmem:[#allocation5 + $0x90] sm:$0xff]   ;;  %v1189_v12 = vld [vmem:[#allocation5 + $0x58] sm:$0xff]   ;;  %v1193_v16 = vld [vmem:[#allocation5 + $0x60] sm:$0xff]   ;;  %s1294_s10 = scalar_lea.vmem %s968_s9, 32  ;;  %p1299_p3 = scmp.lt.s32.totalorder %s968_s9, %s968_s9 }
  0x2c   :  { %1074 = vmatprep.subr.bf16.mxu1 %v1182_v5  ;;  %v1190_v13 = vld [vmem:[#allocation5 + $0xd8] sm:$0xff]   ;;  %v1194_v17 = vld [vmem:[#allocation5 + $0xe0] sm:$0xff]   ;;  %v1197_v20 = vld [vmem:[#allocation5 + $0x68] sm:$0xff]   ;;  %v1378_v35 = vsub.s32 %v190_v29, %v192_v30  ;;  %p1295_p2 = scmp.ne.s32.totalorder %s968_s9, %s1294_s10  ;;  %p1300_p4 = scmp.lt.s32.totalorder %s1294_s10, %s1294_s10 }
  0x2d   :  { %v1191_v14 = vld [vmem:[#allocation5 + $0x18] sm:$0xff]   ;;  %v1195_v18 = vld [vmem:[#allocation5 + $0x20] sm:$0xff]   ;;  %v1198_v21 = vld [vmem:[#allocation5 + $0xe8] sm:$0xff]  }
  0x2e   :  { %1053 = vmatpush3.bf16.msra.mxu0 %v1183_v6  ;;  %v1192_v15 = vld [vmem:[#allocation5 + $0x98] sm:$0xff]   ;;  %v1196_v19 = vld [vmem:[#allocation5 + $0xa0] sm:$0xff]   ;;  %v1199_v25 = vld [vmem:[#allocation5 + $0x28] sm:$0xff]   ;;  %p1301_p5 = por %p1300_p4, %p1299_p3 }
  0x2f   :  { %1075 = vmatpush3.bf16.msra.mxu1 %v1184_v7  ;;  %1054 = vmatprep.subr.bf16.mxu0 %v1185_v8  ;;  %v1200_v26 = vld [vmem:[#allocation5 + $0xa8] sm:$0xff]   ;;  %v1201_v27 = vld [vmem:[#allocation5 + $0x70] sm:$0xff]   ;;  %v1205_v33 = vld [vmem:[#allocation5 + $0x78] sm:$0xff]  }
  0x30   :  { %1076 = vmatprep.subr.bf16.mxu1 %v1186_v9  ;;  %v1202_v28 = vld [vmem:[#allocation5 + $0xf0] sm:$0xff]   ;;  %v1206_v34 = vld [vmem:[#allocation5 + $0xf8] sm:$0xff]   ;;  %v1210_v41 = vld [vmem:[#allocation5 + $0x140] sm:$0xff]   ;;  %p1302_p6 = pnand %p1301_p5, %p1295_p2 }
  0x31   :  { %v1203_v31 = vld [vmem:[#allocation5 + $0x30] sm:$0xff]   ;;  %v1207_v36 = vld [vmem:[#allocation5 + $0x38] sm:$0xff]   ;;  %v1212_v44 = vld [vmem:[#allocation5 + $0x1c0] sm:$0xff]  }
  0x32   :  { %1055 = vmatpush3.bf16.msra.mxu0 %v1187_v10  ;;  %v1204_v32 = vld [vmem:[#allocation5 + $0xb0] sm:$0xff]   ;;  %v1208_v37 = vld [vmem:[#allocation5 + $0xb8] sm:$0xff]   ;;  %v1211_v47 = vld [vmem:[#allocation5 + $0x100] sm:$0xff]  }
  0x33   :  { %1077 = vmatpush3.bf16.msra.mxu1 %v1188_v11  ;;  %1056 = vmatprep.subr.bf16.mxu0 %v1189_v12  ;;  %v39_v38 = vld [vmem:[#allocation2] sm:$0xff]  ;;  %v1214_v50 = vld [vmem:[#allocation5 + $0x148] sm:$0xff]   ;;  %v1213_v52 = vld [vmem:[#allocation5 + $0x180] sm:$0xff]  }
  0x34   :  { %1078 = vmatprep.subr.bf16.mxu1 %v1190_v13  ;;  %v187_v39 = vcombine.high %v39_v38, %v39_v38  ;;  %v194_v40 = vrot.slane %v39_v38, %v1378_v35  ;;  %v1216_v54 = vld [vmem:[#allocation5 + $0x1c8] sm:$0xff]   ;;  %v1218_v57 = vld [vmem:[#allocation5 + $0x150] sm:$0xff]   ;;  %v1222_v61 = vld [vmem:[#allocation5 + $0x158] sm:$0xff]  }
  0x35   :  { %v1215_v55 = vld [vmem:[#allocation5 + $0x108] sm:$0xff]   ;;  %v1220_v59 = vld [vmem:[#allocation5 + $0x1d0] sm:$0xff]   ;;  %v1224_v63 = vld [vmem:[#allocation5 + $0x1d8] sm:$0xff]  }
  0x36   :  { %1057 = vmatpush3.bf16.msra.mxu0 %v1191_v14  ;;  %v202_v42 = vcombine.high %v194_v40, %v194_v40  ;;  %v210_v43 = vrot.slane %v194_v40, %v1378_v35  ;;  %v1383_v45 = vrot.slane %v187_v39, %v1378_v35  ;;  %v1217_v58 = vld [vmem:[#allocation5 + $0x188] sm:$0xff]   ;;  %v1219_v60 = vld [vmem:[#allocation5 + $0x110] sm:$0xff]   ;;  %v1223_v0 = vld [vmem:[#allocation5 + $0x118] sm:$0xff]  }
  0x37   :  { %1079 = vmatpush3.bf16.msra.mxu1 %v1192_v15  ;;  %1058 = vmatprep.subr.bf16.mxu0 %v1193_v16  ;;  %v1221_v62 = vld [vmem:[#allocation5 + $0x190] sm:$0xff]   ;;  %v1226_v1 = vld [vmem:[#allocation5 + $0x160] sm:$0xff]   ;;  %v1225_v2 = vld [vmem:[#allocation5 + $0x198] sm:$0xff]  }
  0x38   :  { %1080 = vmatprep.subr.bf16.mxu1 %v1194_v17  ;;  %v224_v46 = vrot.slane %v202_v42, %v1378_v35  ;;  %v203_v48 = vcombine.high %v1383_v45, %v1383_v45  ;;  %v232_v49 = vcombine.high %v210_v43, %v210_v43  ;;  %v1228_v3 = vld [vmem:[#allocation5 + $0x1e0] sm:$0xff]   ;;  %v1230_v5 = vld [vmem:[#allocation5 + $0x168] sm:$0xff]   ;;  %v1234_v9 = vld [vmem:[#allocation5 + $0x170] sm:$0xff]   ;;  %v217_v17 = vrot.slane %v1383_v45, %v1378_v35 }
  0x39   :  { %v1227_v4 = vld [vmem:[#allocation5 + $0x120] sm:$0xff]   ;;  %v1232_v7 = vld [vmem:[#allocation5 + $0x1e8] sm:$0xff]   ;;  %v1236_v11 = vld [vmem:[#allocation5 + $0x1f0] sm:$0xff]  }
  0x3a   :  { %1059 = vmatpush3.bf16.msra.mxu0 %v1195_v18  ;;  %723 = vmatprep.mubr.bf16.mxu0 %v224_v46  ;;  %v234_v51 = vcombine.high %v224_v46, %v224_v46  ;;  %v231_v53 = vrot.slane %v203_v48, %v1378_v35  ;;  %v1229_v6 = vld [vmem:[#allocation5 + $0x1a0] sm:$0xff]   ;;  %v1231_v8 = vld [vmem:[#allocation5 + $0x128] sm:$0xff]   ;;  %v1235_v12 = vld [vmem:[#allocation5 + $0x130] sm:$0xff]  }
  0x3b   :  { %1081 = vmatpush3.bf16.msra.mxu1 %v1196_v19  ;;  %1060 = vmatprep.subr.bf16.mxu0 %v1197_v20  ;;  %v1233_v10 = vld [vmem:[#allocation5 + $0x1a8] sm:$0xff]   ;;  %v1238_v13 = vld [vmem:[#allocation5 + $0x178] sm:$0xff]   ;;  %v1237_v14 = vld [vmem:[#allocation5 + $0x1b0] sm:$0xff]   ;;  %v1327_v20 = vmov 0.0  }
  0x3c   :  { %1082 = vmatprep.subr.bf16.mxu1 %v1198_v21  ;;  %763 = vmatprep.mubr.bf16.mxu1 %v234_v51  ;;  %v235_v56 = vcombine.high %v231_v53, %v231_v53  ;;  %v1240_v15 = vld [vmem:[#allocation5 + $0x1f8] sm:$0xff]   ;;  %v1242_v19 = vld [vmem:[#allocation5 + $0x200] sm:$0xff]   ;;  %v233_v21 = vcombine.high %v217_v17, %v217_v17  ;;  %v1243_v22 = vld [vmem:[#allocation5 + $0x208] sm:$0xff]  }
  0x3d   :  { %v1239_v16 = vld [vmem:[#allocation5 + $0x138] sm:$0xff]   ;;  %v1244_v23 = vld [vmem:[#allocation5 + $0x210] sm:$0xff]  }
  0x3e   :  { %1061 = vmatpush3.bf16.msra.mxu0 %v1199_v25  ;;  %v1241_v18 = vld [vmem:[#allocation5 + $0x1b8] sm:$0xff]   ;;  %v1246_v25 = vld [vmem:[#allocation5 + $0x220] sm:$0xff]  }
  0x3f   :  { %1083 = vmatpush3.bf16.msra.mxu1 %v1200_v26  ;;  %1062 = vmatprep.subr.bf16.mxu0 %v1201_v27  ;;  %v1245_v24 = vld [vmem:[#allocation5 + $0x218] sm:$0xff]   ;;  %v1247_v26 = vld [vmem:[#allocation5 + $0x228] sm:$0xff]   ;;  %v1248_v27 = vld [vmem:[#allocation5 + $0x230] sm:$0xff]  }
  0x40   :  { %1084 = vmatprep.subr.bf16.mxu1 %v1202_v28  ;;  %v1249_v28 = vld [vmem:[#allocation5 + $0x238] sm:$0xff]  }
  0x41   :  { %v977_v29 = vld.sshfl [vmem:[#allocation2 + $0x8] sm:$0x1 pattern:$0x75316420] }
  0x42   :  { %1063 = vmatpush3.bf16.msra.mxu0 %v1203_v31  ;;  %v249_v30 = vrot.slane %v977_v29, %v1378_v35 }
  0x43   :  { %1085 = vmatpush3.bf16.msra.mxu1 %v1204_v32  ;;  %1064 = vmatprep.subr.bf16.mxu0 %v1205_v33 }
  0x44   :  { %1086 = vmatprep.subr.bf16.mxu1 %v1206_v34 }
  0x46   :  { %1065 = vmatpush3.bf16.msra.mxu0 %v1207_v36 }
  0x47   :  { %1087 = vmatpush3.bf16.msra.mxu1 %v1208_v37  ;;  %1094 = vmatprep.subr.bf16.mxu0 %v1210_v41 }
  0x48   :  { %1116 = vmatprep.subr.bf16.mxu1 %v1212_v44 }
  0x49   :  { %724 = vmatmul.mubr.bf16.vlgmr.msra.gmra.mrb[0].mxu0 %v210_v43 }
  0x4a   :  { %1095 = vmatpush3.bf16.msra.mxu0 %v1211_v47  ;;  %764 = vmatmul.mubr.bf16.vlgmr.msra.gmra.mrb[0].mxu1 %v232_v49 }
  0x4b   :  { %1096 = vmatprep.subr.bf16.mxu0 %v1214_v50  ;;  %1117 = vmatpush3.bf16.msra.mxu1 %v1213_v52 }
  0x4c   :  { %803 = vmatprep.mubr.bf16.mxu0 %v231_v53  ;;  %1118 = vmatprep.subr.bf16.mxu1 %v1216_v54 }
  0x4d   :  { %843 = vmatprep.mubr.bf16.mxu1 %v235_v56 }
  0x4e   :  { %1097 = vmatpush3.bf16.msra.mxu0 %v1215_v55 }
  0x4f   :  { %1098 = vmatprep.subr.bf16.mxu0 %v1218_v57  ;;  %1119 = vmatpush3.bf16.msra.mxu1 %v1217_v58 }
  0x50   :  { %1120 = vmatprep.subr.bf16.mxu1 %v1220_v59 }
  0x52   :  { %1099 = vmatpush3.bf16.msra.mxu0 %v1219_v60 }
  0x53   :  { %1100 = vmatprep.subr.bf16.mxu0 %v1222_v61  ;;  %1121 = vmatpush3.bf16.msra.mxu1 %v1221_v62 }
  0x54   :  { %1122 = vmatprep.subr.bf16.mxu1 %v1224_v63 }
  0x56   :  { %1101 = vmatpush3.bf16.msra.mxu0 %v1223_v0 }
  0x57   :  { %1102 = vmatprep.subr.bf16.mxu0 %v1226_v1  ;;  %1123 = vmatpush3.bf16.msra.mxu1 %v1225_v2 }
  0x58   :  { %1124 = vmatprep.subr.bf16.mxu1 %v1228_v3 }
  0x5a   :  { %1103 = vmatpush3.bf16.msra.mxu0 %v1227_v4 }
  0x5b   :  { %1104 = vmatprep.subr.bf16.mxu0 %v1230_v5  ;;  %1125 = vmatpush3.bf16.msra.mxu1 %v1229_v6 }
  0x5c   :  { %1126 = vmatprep.subr.bf16.mxu1 %v1232_v7 }
  0x5e   :  { %1105 = vmatpush3.bf16.msra.mxu0 %v1231_v8 }
  0x5f   :  { %1106 = vmatprep.subr.bf16.mxu0 %v1234_v9  ;;  %1127 = vmatpush3.bf16.msra.mxu1 %v1233_v10 }
  0x60   :  { %1128 = vmatprep.subr.bf16.mxu1 %v1236_v11 }
  0x62   :  { %1107 = vmatpush3.bf16.msra.mxu0 %v1235_v12 }
  0x63   :  { %1108 = vmatprep.subr.bf16.mxu0 %v1238_v13  ;;  %1129 = vmatpush3.bf16.msra.mxu1 %v1237_v14 }
  0x64   :  { %1130 = vmatprep.subr.bf16.mxu1 %v1240_v15 }
  0x66   :  { %1109 = vmatpush3.bf16.msra.mxu0 %v1239_v16 }
  0x67   :  { %1147 = vmatprep.subr.bf16.mxu0 %v1327_v20  ;;  %1131 = vmatpush3.bf16.msra.mxu1 %v1241_v18 }
  0x69   :  { %804 = vmatmul.mubr.bf16.vlgmr.msra.gmra.mrb[4].mxu0 %v217_v17 }
  0x6a   :  { %1148 = vmatpush3.bf16.msra.mxu0 %v1242_v19  ;;  %1163 = vmatprep.mubr.msk.bf16.mxu0 %vm1328_vm0, %v1327_v20 }
  0x6b   :  { %844 = vmatmul.mubr.bf16.vlgmr.msra.gmra.mrb[4].mxu1 %v233_v21  ;;  %1149 = vmatprep.subr.bf16.mxu0 %v1327_v20 }
  0x6e   :  { %1150 = vmatpush3.bf16.msra.mxu0 %v1243_v22 }
  0x6f   :  { %1151 = vmatprep.subr.bf16.mxu0 %v1327_v20 }
  0x72   :  { %1152 = vmatpush3.bf16.msra.mxu0 %v1244_v23 }
  0x73   :  { %1153 = vmatprep.subr.bf16.mxu0 %v1327_v20 }
  0x76   :  { %1154 = vmatpush3.bf16.msra.mxu0 %v1245_v24 }
  0x77   :  { %1155 = vmatprep.subr.bf16.mxu0 %v1327_v20 }
  0x7a   :  { %1156 = vmatpush3.bf16.msra.mxu0 %v1246_v25 }
  0x7b   :  { %1157 = vmatprep.subr.bf16.mxu0 %v1327_v20 }
  0x7e   :  { %1158 = vmatpush3.bf16.msra.mxu0 %v1247_v26 }
  0x7f   :  { %1159 = vmatprep.subr.bf16.mxu0 %v1327_v20 }
  0x82   :  { %1160 = vmatpush3.bf16.msra.mxu0 %v1248_v27 }
  0x83   :  { %1161 = vmatprep.subr.bf16.mxu0 %v1327_v20 }
  0x86   :  { %1162 = vmatpush3.bf16.msra.mxu0 %v1249_v28 }
  0x89   :  { %1164 = vmatmul.mubr.bf16.vlgmr.msra.gmra.mrb[8].mxu0 %v249_v30 }
 0x11c   :  { %v1066_v31 = vpop.f32.mrb[0].mxu0 }
 0x11d   :  { %v1067_v32 = vpop.f32.mrb[1].mxu0  ;;  %v1088_v33 = vpop.f32.mrb[0].mxu1 }
 0x11e   :  { %v1068_v34 = vadd.f32 %v1067_v32, %v1066_v31  ;;  %v1069_v36 = vpop.f32.mrb[2].mxu0  ;;  %v1089_v37 = vpop.f32.mrb[1].mxu1 }
 0x11f   :  { %v1070_v38 = vpop.f32.mrb[3].mxu0  ;;  %v1090_v39 = vadd.f32 %v1089_v37, %v1088_v33  ;;  %v1091_v40 = vpop.f32.mrb[2].mxu1 }
 0x120   :  { %v1092_v41 = vpop.f32.mrb[3].mxu1 }
 0x121   :  { %v766_v42 = vadd.f32 %v1090_v39, %v1068_v34 }
 0x13c   :  { %v1110_v43 = vpop.f32.mrb[4].mxu0 }
 0x13d   :  { %v1111_v44 = vpop.f32.mrb[5].mxu0 }
 0x13e   :  { %v1112_v45 = vadd.f32 %v1111_v44, %v1110_v43  ;;  %v1113_v46 = vpop.f32.mrb[6].mxu0  ;;  %v1132_v47 = vpop.f32.mrb[4].mxu1 }
 0x13f   :  { %v1114_v48 = vpop.f32.mrb[7].mxu0  ;;  %v1133_v35 = vpop.f32.mrb[5].mxu1 }
 0x140   :  { %v806_v49 = vadd.f32 %v1112_v45, %v766_v42  ;;  %v1134_v50 = vadd.f32 %v1133_v35, %v1132_v47  ;;  %v1135_v51 = vpop.f32.mrb[6].mxu1 }
 0x141   :  { %v1136_v52 = vpop.f32.mrb[7].mxu1 }
 0x142   :  { %v846_v53 = vadd.f32 %v1134_v50, %v806_v49 }
 0x15c   :  { %v885_v54 = vpop.f32.mrb[8].mxu0 }
 0x15d   :  { %v1392_v55 = vadd.f32 %v885_v54, %v846_v53  ;;  %v1165_v56 = vpop.f32.mrb[9].mxu0 }
 0x15e   :  { %v888_v57 = vpop.f32.mrb[10].mxu0 }
 0x15f   :  { %v1166_v58 = vpop.f32.mrb[11].mxu0  ;;  %v891_v59 = vmul.f32 %v1392_v55, %v1392_v55 }
 0x161   :  { %v893_v60 = vsel %vm892_vm1, %v891_v59, 0.0 }
 0x162   :  { %894 = vadd.xlane.f32.xlu0 %v893_v60 }
 0x1ef   :  { %v895_v61 = vpop.xlane.xlu0 %894 }
 0x1f0   :  { %v896_v62 = vadd.f32 0.25, %v895_v61 }
 0x1f2   :  { %v897_v63 = vmul.f32 0.8888889, %v896_v62 }
 0x1f4   :  { %v899_v0 = vsub.f32 1.0, %v897_v63  ;;  %v898_v2 = vsub.f32 2.0, %v897_v63 }
 0x1f6   :  { %v900_v1 = vmul.f32 %v899_v0, %v899_v0 }
 0x1f8   :  { %v901_v3 = vadd.f32 1.0, %v900_v1  ;;  %v903_v4 = vmul.f32 %v900_v1, %v900_v1 }
 0x1fa   :  { %v902_v5 = vmul.f32 %v901_v3, %v898_v2  ;;  %v904_v6 = vadd.f32 1.0, %v903_v4  ;;  %v906_v7 = vmul.f32 %v903_v4, %v903_v4 }
 0x1fc   :  { %v905_v8 = vmul.f32 %v904_v6, %v902_v5  ;;  %v907_v9 = vadd.f32 1.0, %v906_v7 }
 0x1fe   :  { %v908_v10 = vmul.f32 %v907_v9, %v905_v8 }
 0x200   :  { %v909_v11 = vmul.f32 0.8888889, %v908_v10 }
 0x202   :  { %v910_v12 = vmul.f32 %v909_v11, %v891_v59  ;;  %v911_v15 = vmul.f32 0.25, %v909_v11 }
 0x204   :  { %v912_v13 = vmul.f32 %v910_v12, %v910_v12  ;;  %v913_v16 = vmul.f32 %v911_v15, %v911_v15 }
 0x206   :  { %v914_v14 = vsel %vm892_vm1, %v912_v13, 0.0 }
 0x207   :  { %915 = vadd.xlane.f32.xlu0 %v914_v14 }
 0x294   :  { %v916_v17 = vpop.xlane.xlu0 %915 }
 0x295   :  { %v917_v18 = vadd.f32 %v916_v17, %v913_v16 }
 0x297   :  { %v919_v19 = vsub.f32 1.0, %v917_v18  ;;  %v918_v21 = vsub.f32 2.0, %v917_v18 }
 0x299   :  { %v920_v20 = vmul.f32 %v919_v19, %v919_v19 }
 0x29b   :  { %v921_v22 = vadd.f32 1.0, %v920_v20  ;;  %v923_v23 = vmul.f32 %v920_v20, %v920_v20 }
 0x29d   :  { %v922_v24 = vmul.f32 %v921_v22, %v918_v21  ;;  %v924_v25 = vadd.f32 1.0, %v923_v23  ;;  %v926_v26 = vmul.f32 %v923_v23, %v923_v23 }
 0x29f   :  { %v925_v27 = vmul.f32 %v924_v25, %v922_v24  ;;  %v927_v28 = vadd.f32 1.0, %v926_v26 }
 0x2a1   :  { %v928_v29 = vmul.f32 %v927_v28, %v925_v27 }
 0x2a3   :  { %v929_v30 = vmul.f32 %v928_v29, %v912_v13  ;;  %v930_v31 = vmul.f32 %v928_v29, %v913_v16 }
 0x2a5   :  { %v931_v32 = vmul.f32 %v929_v30, %v929_v30  ;;  %v932_v34 = vmul.f32 %v930_v31, %v930_v31 }
 0x2a7   :  { %v933_v33 = vsel %vm892_vm1, %v931_v32, 0.0 }
 0x2a8   :  { %934 = vadd.xlane.f32.xlu1 %v933_v33 }
 0x2b9   :  { %950 = vrot.lane.b32.xlu1 %v1392_v55, %s1329_s1 }
 0x335   :  { %v935_v36 = vpop.xlane.xlu1 %934 }
 0x336   :  { %v936_v37 = vadd.f32 %v935_v36, %v932_v34 }
 0x338   :  { %v938_v38 = vsub.f32 1.0, %v936_v37  ;;  %v937_v40 = vsub.f32 2.0, %v936_v37 }
 0x339   :  { %v951_v48 = vpop.permute.xlu1 %950 }
 0x33a   :  { %v939_v39 = vmul.f32 %v938_v38, %v938_v38  ;;  %v953_v50 = vsub.f32 %v1392_v55, %v951_v48 }
 0x33c   :  { %v940_v41 = vadd.f32 1.0, %v939_v39  ;;  %v942_v42 = vmul.f32 %v939_v39, %v939_v39 }
 0x33e   :  { %v941_v43 = vmul.f32 %v940_v41, %v937_v40  ;;  %v943_v44 = vadd.f32 1.0, %v942_v42  ;;  %v945_v45 = vmul.f32 %v942_v42, %v942_v42 }
 0x340   :  { %v944_v46 = vmul.f32 %v943_v44, %v941_v43  ;;  %v946_v47 = vadd.f32 1.0, %v945_v45 }
 0x342   :  { %v947_v35 = vmul.f32 %v946_v47, %v944_v46 }
 0x344   :  { %v948_v49 = vmul.f32 %v947_v35, %v932_v34 }
 0x346   :  { %v954_v51 = vmul.f32 %v953_v50, %v948_v49 }
 0x348   :  { %956 = vrot.lane.b32.xlu0 %v954_v51, %s1330_s7 }
 0x3ba   :  { %v957_v52 = vpop.permute.xlu0 %956 }
 0x3bb   :  { %v959_v53 = vadd.f32 %v957_v52, %v1392_v55 }
 0x3bd   :  { %960 = vst.msk [vmem:[#allocation7] sm:$0x3] %vm892_vm1, %v959_v53 }
 0x3be   :  { %1305 = shalt.err (!%p1302_p6)
}
 0x3bf   :  { %s1306_s13 = scalar_lea.hbm %s1417_s2, 32 }
 0x3c0   :  { %p1307_p7 = scmp.ne.s32.totalorder %s1417_s2, %s1306_s13  ;;  %p1310_p8 = scmp.lt.u32.totalorder %s1306_s13, %s1417_s2 }
 0x3c2   :  { %p1312_p9 = pnand %p1310_p8, %p1307_p7 }
 0x3c4   :  { %1315 = shalt.err (!%p1312_p9)
}
 0x3c5   :  { %970 = dma.vmem_to_hbm [thread:$0]  %s968_s9, 32, %s1417_s2, [#allocation4]  }
 0x3c6   :  { %1320 = dma.done.wait [#allocation4], 32  }
 0x3c7   :  { %1321 = vsyncadd [#allocation4], 4294967264 }
 0x3c8   :  { %974 = vsyncpa [#allocation3], 1 }
 0x3c9   :  { %975 = vsyncpa [#allocation6], 1 }
 0x3ca   :  { %976 = vsyncpa [#allocation4], 1 }

</bundles_post_ra>
